<compile_context>
chip_gen: v7x
topology: tpu7x:2x2x1
jax: 0.10.0
libtpu: 0.0.40
codegen_flags: <defaults>
</compile_context>

<pallas_src>
import jax
import jax.numpy as jnp
from jax.experimental import pallas as pl
from jax.experimental.pallas import tpu as pltpu


def _round_up(a, b):
    return (a + b - 1) // b * b


def _residual_block_kernel(x_ref, w1_ref, c1_ref, w2_ref, c2_ref, o_ref):
    x = x_ref[...]  # f32, (block_n, Dp)

    # fc1 (BN1 scale pre-folded into W1'): bf16 MXU matmul, f32 accumulate.
    h = jnp.dot(x.astype(jnp.bfloat16), w1_ref[...],
                preferred_element_type=jnp.float32)
    h = jnp.maximum(h + c1_ref[...], 0.0)          # bias/BN shift + relu (VPU)
    # dropout: identity in eval mode

    # fc2 (BN2 scale pre-folded into W2'): bf16 MXU matmul, f32 accumulate.
    o = jnp.dot(h.astype(jnp.bfloat16), w2_ref[...],
                preferred_element_type=jnp.float32)
    o = o + c2_ref[...] + x                        # shift + residual (f32)
    o_ref[...] = jnp.maximum(o, 0.0).astype(o_ref.dtype)


def _make_callable(Np, Dp, bn, dtype, *, single_buffer_params):
    # Weights / per-feature vectors have a constant index_map (fetched once);
    # single-buffering them halves their VMEM footprint.
    extra = {"pipeline_mode": pl.Buffered(1)} if single_buffer_params else {}
    row_spec = pl.BlockSpec((bn, Dp), lambda i: (i, 0))          # tiled over batch
    mat_spec = pl.BlockSpec((Dp, Dp), lambda i: (0, 0), **extra)  # resident weights
    vec_spec = pl.BlockSpec((1, Dp), lambda i: (0, 0), **extra)   # per-feature shift

    return pl.pallas_call(
        _residual_block_kernel,
        out_shape=jax.ShapeDtypeStruct((Np, Dp), dtype),
        grid_spec=pltpu.PrefetchScalarGridSpec(
            num_scalar_prefetch=0,
            grid=(Np // bn,),
            in_specs=[row_spec, mat_spec, vec_spec, mat_spec, vec_spec],
            out_specs=row_spec,
        ),
        compiler_params=pltpu.CompilerParams(
            dimension_semantics=("parallel",),
            vmem_limit_bytes=64 * 1024 * 1024,
        ),
        # Output has same shape/dtype as (padded) x; each block's residual read
        # completes before that block's writeback, so aliasing is safe.
        input_output_aliases={0: 0},
        cost_estimate=pl.CostEstimate(
            flops=4 * Np * Dp * Dp,
            transcendentals=0,
            bytes_accessed=2 * Np * Dp * 4 + 2 * Dp * Dp * 2 + 2 * Dp * 4,
        ),
    )


def residual_block(x, w1, c1, w2, c2, *, block_n=256):
    """x: (N, D) f32. w1/w2: (D, D) bf16, already transposed for x @ W and with the
    eval-mode BN scale folded in. c1/c2: (1, D) f32 combined bias+BN shift."""
    N, D = x.shape
    Dp = _round_up(D, 128)                  # lane-dense feature dim
    bn = min(block_n, _round_up(N, 8))      # f32 sublane-aligned batch tile
    Np = _round_up(N, bn)

    if (Np, Dp) != (N, D):
        x = jnp.pad(x, ((0, Np - N), (0, Dp - D)))
        pad_w = ((0, Dp - D), (0, Dp - D))
        pad_v = ((0, 0), (0, Dp - D))
        w1 = jnp.pad(w1, pad_w)
        w2 = jnp.pad(w2, pad_w)
        c1 = jnp.pad(c1, pad_v)
        c2 = jnp.pad(c2, pad_v)

    try:
        out = _make_callable(Np, Dp, bn, x.dtype, single_buffer_params=True)(
            x, w1, c1, w2, c2)
    except Exception:
        # Fallback for jax versions without BlockSpec pipeline_mode support.
        out = _make_callable(Np, Dp, bn, x.dtype, single_buffer_params=False)(
            x, w1, c1, w2, c2)

    return out[:N, :D]


def make_params(dim, key):
    """Deterministic synthetic parameters matching the PyTorch module's shapes,
    with eval-mode BatchNorm folded into the linear weights/bias."""
    ks = jax.random.split(key, 8)
    bound = 1.0 / jnp.sqrt(dim)
    # nn.Linear(dim, dim): weight (out, in), bias (out,)
    w1 = jax.random.uniform(ks[0], (dim, dim), jnp.float32, -bound, bound)
    b1 = jax.random.uniform(ks[1], (dim,), jnp.float32, -bound, bound)
    w2 = jax.random.uniform(ks[2], (dim, dim), jnp.float32, -bound, bound)
    b2 = jax.random.uniform(ks[3], (dim,), jnp.float32, -bound, bound)
    # nn.BatchNorm1d(dim): gamma, beta, running_mean, running_var (eval mode)
    g1 = 1.0 + 0.1 * jax.random.normal(ks[4], (dim,), jnp.float32)
    be1 = 0.1 * jax.random.normal(ks[5], (dim,), jnp.float32)
    rm1 = jnp.zeros((dim,), jnp.float32)
    rv1 = jnp.ones((dim,), jnp.float32)
    g2 = 1.0 + 0.1 * jax.random.normal(ks[6], (dim,), jnp.float32)
    be2 = 0.1 * jax.random.normal(ks[7], (dim,), jnp.float32)
    rm2 = jnp.zeros((dim,), jnp.float32)
    rv2 = jnp.ones((dim,), jnp.float32)
    eps = 1e-5

    # BN(eval): y = z*s + t with s = g/sqrt(rv+eps), t = be - rm*s
    s1 = g1 / jnp.sqrt(rv1 + eps)
    t1 = be1 - rm1 * s1
    s2 = g2 / jnp.sqrt(rv2 + eps)
    t2 = be2 - rm2 * s2

    # Fold BN scale into the transposed weights (per output column) and collapse
    # the bias: relu((x@W.T + b)*s + t) == relu(x@(W.T*s) + (b*s + t)).
    w1f = (w1.T * s1[None, :]).astype(jnp.bfloat16)
    c1 = (b1 * s1 + t1)[None, :].astype(jnp.float32)
    w2f = (w2.T * s2[None, :]).astype(jnp.bfloat16)
    c2 = (b2 * s2 + t2)[None, :].astype(jnp.float32)
    return dict(w1=w1f, c1=c1, w2=w2f, c2=c2)


def reference(x, p):
    # Same bf16-operand / f32-accumulate math as the kernel.
    h = jnp.dot(x.astype(jnp.bfloat16), p["w1"],
                preferred_element_type=jnp.float32) + p["c1"]
    h = jnp.maximum(h, 0.0)
    o = jnp.dot(h.astype(jnp.bfloat16), p["w2"],
                preferred_element_type=jnp.float32) + p["c2"] + x
    return jnp.maximum(o, 0.0)


if __name__ == "__main__":
    key = jax.random.PRNGKey(0)
    kx, kp = jax.random.split(key)

    N, D = 8, 32                     # batch=8, hidden dim=32
    x = jax.random.normal(kx, (N, D), jnp.float32)
    params = make_params(D, kp)

    out = residual_block(x, params["w1"], params["c1"],
                         params["w2"], params["c2"])
    out = jax.block_until_ready(out)

    ref = reference(x, params)
    assert out.shape == (N, D)
    assert jnp.allclose(out, ref, atol=1e-2, rtol=1e-2), \
        float(jnp.max(jnp.abs(out - ref)))

    print("KERNEL_OK")
</pallas_src>

<mosaic_0001>
module attributes {stable_mosaic.version = 11 : i64} {
  func.func @_residual_block_kernel(%arg0: i32, %arg1: memref<8x128xf32, #tpu.memory_space<vmem>>, %arg2: memref<128x128xbf16, #tpu.memory_space<vmem>>, %arg3: memref<1x128xf32, #tpu.memory_space<vmem>>, %arg4: memref<128x128xbf16, #tpu.memory_space<vmem>>, %arg5: memref<1x128xf32, #tpu.memory_space<vmem>>, %arg6: memref<8x128xf32, #tpu.memory_space<vmem>>) attributes {dimension_semantics = [#tpu.dimension_semantics<parallel>], iteration_bounds = array<i64: 1>, scalar_prefetch = 0 : i64, scratch_operands = 0 : i64, tpu.core_type = #tpu.core_type<tc>, window_params = [{transform_indices = @transform_0, window_bounds = array<i64: 8, 128>}, {pipeline_mode = #tpu.pipeline_mode<synchronous>, transform_indices = @transform_1, window_bounds = array<i64: 128, 128>}, {pipeline_mode = #tpu.pipeline_mode<synchronous>, transform_indices = @transform_2, window_bounds = array<i64: 1, 128>}, {pipeline_mode = #tpu.pipeline_mode<synchronous>, transform_indices = @transform_3, window_bounds = array<i64: 128, 128>}, {pipeline_mode = #tpu.pipeline_mode<synchronous>, transform_indices = @transform_4, window_bounds = array<i64: 1, 128>}, {transform_indices = @transform_5, window_bounds = array<i64: 8, 128>}]} {
    %c0 = arith.constant 0 : index
    %c0_0 = arith.constant 0 : index
    %0 = vector.load %arg1[%c0, %c0_0] : memref<8x128xf32, #tpu.memory_space<vmem>>, vector<8x128xf32>
    %1 = arith.truncf %0 : vector<8x128xf32> to vector<8x128xbf16>
    %c0_1 = arith.constant 0 : index
    %c0_2 = arith.constant 0 : index
    %2 = vector.load %arg2[%c0_1, %c0_2] : memref<128x128xbf16, #tpu.memory_space<vmem>>, vector<128x128xbf16>
    %cst = arith.constant dense<0.000000e+00> : vector<8x128xf32>
    %3 = tpu.matmul %1, %2, %cst {dimension_numbers = #tpu.dot_dimension_numbers<[1], [0], [0], [1], [0, 0, 1, 1], [], []>} : vector<8x128xbf16>, vector<128x128xbf16>, vector<8x128xf32> -> vector<8x128xf32>
    %c0_3 = arith.constant 0 : index
    %c0_4 = arith.constant 0 : index
    %4 = vector.load %arg3[%c0_3, %c0_4] : memref<1x128xf32, #tpu.memory_space<vmem>>, vector<1x128xf32>
    %5 = vector.broadcast %4 : vector<1x128xf32> to vector<8x128xf32>
    %6 = arith.addf %3, %5 : vector<8x128xf32>
    %cst_5 = arith.constant 0.000000e+00 : f32
    %7 = vector.broadcast %cst_5 : f32 to vector<8x128xf32>
    %8 = arith.maximumf %6, %7 : vector<8x128xf32>
    %9 = arith.truncf %8 : vector<8x128xf32> to vector<8x128xbf16>
    %c0_6 = arith.constant 0 : index
    %c0_7 = arith.constant 0 : index
    %10 = vector.load %arg4[%c0_6, %c0_7] : memref<128x128xbf16, #tpu.memory_space<vmem>>, vector<128x128xbf16>
    %cst_8 = arith.constant dense<0.000000e+00> : vector<8x128xf32>
    %11 = tpu.matmul %9, %10, %cst_8 {dimension_numbers = #tpu.dot_dimension_numbers<[1], [0], [0], [1], [0, 0, 1, 1], [], []>} : vector<8x128xbf16>, vector<128x128xbf16>, vector<8x128xf32> -> vector<8x128xf32>
    %c0_9 = arith.constant 0 : index
    %c0_10 = arith.constant 0 : index
    %12 = vector.load %arg5[%c0_9, %c0_10] : memref<1x128xf32, #tpu.memory_space<vmem>>, vector<1x128xf32>
    %13 = vector.broadcast %12 : vector<1x128xf32> to vector<8x128xf32>
    %14 = arith.addf %11, %13 : vector<8x128xf32>
    %15 = arith.addf %14, %0 : vector<8x128xf32>
    %cst_11 = arith.constant 0.000000e+00 : f32
    %16 = vector.broadcast %cst_11 : f32 to vector<8x128xf32>
    %17 = arith.maximumf %15, %16 : vector<8x128xf32>
    %c0_12 = arith.constant 0 : index
    %c0_13 = arith.constant 0 : index
    %18 = vector.load %arg6[%c0_12, %c0_13] : memref<8x128xf32, #tpu.memory_space<vmem>>, vector<8x128xf32>
    tpu.vector_store %arg6[%c0_12, %c0_13], %17 {strides = array<i32>} : memref<8x128xf32, #tpu.memory_space<vmem>>, vector<8x128xf32>,
    return
  }
  func.func @transform_0(%arg0: i32) -> (i32, i32) {
    %c0_i32 = arith.constant 0 : i32
    %c0_i32_0 = arith.constant 0 : i32
    return %arg0, %c0_i32 : i32, i32
  }
  func.func @transform_1(%arg0: i32) -> (i32, i32) {
    %c0_i32 = arith.constant 0 : i32
    %c0_i32_0 = arith.constant 0 : i32
    %c0_i32_1 = arith.constant 0 : i32
    return %c0_i32, %c0_i32_0 : i32, i32
  }
  func.func @transform_2(%arg0: i32) -> (i32, i32) {
    %c0_i32 = arith.constant 0 : i32
    %c0_i32_0 = arith.constant 0 : i32
    %c0_i32_1 = arith.constant 0 : i32
    return %c0_i32, %c0_i32_0 : i32, i32
  }
  func.func @transform_3(%arg0: i32) -> (i32, i32) {
    %c0_i32 = arith.constant 0 : i32
    %c0_i32_0 = arith.constant 0 : i32
    %c0_i32_1 = arith.constant 0 : i32
    return %c0_i32, %c0_i32_0 : i32, i32
  }
  func.func @transform_4(%arg0: i32) -> (i32, i32) {
    %c0_i32 = arith.constant 0 : i32
    %c0_i32_0 = arith.constant 0 : i32
    %c0_i32_1 = arith.constant 0 : i32
    return %c0_i32, %c0_i32_0 : i32, i32
  }
  func.func @transform_5(%arg0: i32) -> (i32, i32) {
    %c0_i32 = arith.constant 0 : i32
    %c0_i32_0 = arith.constant 0 : i32
    return %arg0, %c0_i32 : i32, i32
  }
}

module attributes {stable_mosaic.version = 11 : i64} {
  func.func @_residual_block_kernel(%arg0: i32, %arg1: memref<8x128xf32, #tpu.memory_space<vmem>>, %arg2: memref<128x128xbf16, #tpu.memory_space<vmem>>, %arg3: memref<1x128xf32, #tpu.memory_space<vmem>>, %arg4: memref<128x128xbf16, #tpu.memory_space<vmem>>, %arg5: memref<1x128xf32, #tpu.memory_space<vmem>>, %arg6: memref<8x128xf32, #tpu.memory_space<vmem>>) attributes {dimension_semantics = [#tpu.dimension_semantics<parallel>], iteration_bounds = array<i64: 1>, scalar_prefetch = 0 : i64, scratch_operands = 0 : i64, tpu.core_type = #tpu.core_type<tc>, window_params = [{transform_indices = @transform_0, window_bounds = array<i64: 8, 128>}, {pipeline_mode = #tpu.pipeline_mode<synchronous>, transform_indices = @transform_1, window_bounds = array<i64: 128, 128>}, {pipeline_mode = #tpu.pipeline_mode<synchronous>, transform_indices = @transform_2, window_bounds = array<i64: 1, 128>}, {pipeline_mode = #tpu.pipeline_mode<synchronous>, transform_indices = @transform_3, window_bounds = array<i64: 128, 128>}, {pipeline_mode = #tpu.pipeline_mode<synchronous>, transform_indices = @transform_4, window_bounds = array<i64: 1, 128>}, {transform_indices = @transform_5, window_bounds = array<i64: 8, 128>}]} {
    %c0 = arith.constant 0 : index
    %c0_0 = arith.constant 0 : index
    %0 = vector.load %arg1[%c0, %c0_0] : memref<8x128xf32, #tpu.memory_space<vmem>>, vector<8x128xf32>
    %1 = arith.truncf %0 : vector<8x128xf32> to vector<8x128xbf16>
    %c0_1 = arith.constant 0 : index
    %c0_2 = arith.constant 0 : index
    %2 = vector.load %arg2[%c0_1, %c0_2] : memref<128x128xbf16, #tpu.memory_space<vmem>>, vector<128x128xbf16>
    %cst = arith.constant dense<0.000000e+00> : vector<8x128xf32>
    %3 = tpu.matmul %1, %2, %cst {dimension_numbers = #tpu.dot_dimension_numbers<[1], [0], [0], [1], [0, 0, 1, 1], [], []>} : vector<8x128xbf16>, vector<128x128xbf16>, vector<8x128xf32> -> vector<8x128xf32>
    %c0_3 = arith.constant 0 : index
    %c0_4 = arith.constant 0 : index
    %4 = vector.load %arg3[%c0_3, %c0_4] : memref<1x128xf32, #tpu.memory_space<vmem>>, vector<1x128xf32>
    %5 = vector.broadcast %4 : vector<1x128xf32> to vector<8x128xf32>
    %6 = arith.addf %3, %5 : vector<8x128xf32>
    %cst_5 = arith.constant 0.000000e+00 : f32
    %7 = vector.broadcast %cst_5 : f32 to vector<8x128xf32>
    %8 = arith.maximumf %6, %7 : vector<8x128xf32>
    %9 = arith.truncf %8 : vector<8x128xf32> to vector<8x128xbf16>
    %c0_6 = arith.constant 0 : index
    %c0_7 = arith.constant 0 : index
    %10 = vector.load %arg4[%c0_6, %c0_7] : memref<128x128xbf16, #tpu.memory_space<vmem>>, vector<128x128xbf16>
    %cst_8 = arith.constant dense<0.000000e+00> : vector<8x128xf32>
    %11 = tpu.matmul %9, %10, %cst_8 {dimension_numbers = #tpu.dot_dimension_numbers<[1], [0], [0], [1], [0, 0, 1, 1], [], []>} : vector<8x128xbf16>, vector<128x128xbf16>, vector<8x128xf32> -> vector<8x128xf32>
    %c0_9 = arith.constant 0 : index
    %c0_10 = arith.constant 0 : index
    %12 = vector.load %arg5[%c0_9, %c0_10] : memref<1x128xf32, #tpu.memory_space<vmem>>, vector<1x128xf32>
    %13 = vector.broadcast %12 : vector<1x128xf32> to vector<8x128xf32>
    %14 = arith.addf %11, %13 : vector<8x128xf32>
    %15 = arith.addf %14, %0 : vector<8x128xf32>
    %cst_11 = arith.constant 0.000000e+00 : f32
    %16 = vector.broadcast %cst_11 : f32 to vector<8x128xf32>
    %17 = arith.maximumf %15, %16 : vector<8x128xf32>
    %c0_12 = arith.constant 0 : index
    %c0_13 = arith.constant 0 : index
    %18 = vector.load %arg6[%c0_12, %c0_13] : memref<8x128xf32, #tpu.memory_space<vmem>>, vector<8x128xf32>
    tpu.vector_store %arg6[%c0_12, %c0_13], %17 {strides = array<i32>} : memref<8x128xf32, #tpu.memory_space<vmem>>, vector<8x128xf32>,
    return
  }
  func.func @transform_0(%arg0: i32) -> (i32, i32) {
    %c0_i32 = arith.constant 0 : i32
    %c0_i32_0 = arith.constant 0 : i32
    return %arg0, %c0_i32 : i32, i32
  }
  func.func @transform_1(%arg0: i32) -> (i32, i32) {
    %c0_i32 = arith.constant 0 : i32
    %c0_i32_0 = arith.constant 0 : i32
    %c0_i32_1 = arith.constant 0 : i32
    return %c0_i32, %c0_i32_0 : i32, i32
  }
  func.func @transform_2(%arg0: i32) -> (i32, i32) {
    %c0_i32 = arith.constant 0 : i32
    %c0_i32_0 = arith.constant 0 : i32
    %c0_i32_1 = arith.constant 0 : i32
    return %c0_i32, %c0_i32_0 : i32, i32
  }
  func.func @transform_3(%arg0: i32) -> (i32, i32) {
    %c0_i32 = arith.constant 0 : i32
    %c0_i32_0 = arith.constant 0 : i32
    %c0_i32_1 = arith.constant 0 : i32
    return %c0_i32, %c0_i32_0 : i32, i32
  }
  func.func @transform_4(%arg0: i32) -> (i32, i32) {
    %c0_i32 = arith.constant 0 : i32
    %c0_i32_0 = arith.constant 0 : i32
    %c0_i32_1 = arith.constant 0 : i32
    return %c0_i32, %c0_i32_0 : i32, i32
  }
  func.func @transform_5(%arg0: i32) -> (i32, i32) {
    %c0_i32 = arith.constant 0 : i32
    %c0_i32_0 = arith.constant 0 : i32
    return %arg0, %c0_i32 : i32, i32
  }
}

</mosaic_0001>

<bundles_post_ra>
// kernel: tpu_custom_call.1
= control target key start
LH: loop header
LB: loop body
LE: loop exit
PB: predicated region body
PF: predicated region fallthrough
CT: control target
= control target key end

     0   :  { %10 = vsyncpa [#allocation3], 0  ;;  %s684_s0 = inlined_call_operand.hbm [shape: f32[8,128], index: 0, kind: input, shape index: {}, may-alias: {0,5}]   ;;  %s685_s1 = inlined_call_operand.hbm [shape: bf16[128,128], index: 1, kind: input, shape index: {}]   ;;  %s686_s2 = inlined_call_operand.hbm [shape: f32[1,128], index: 2, kind: input, shape index: {}]   ;;  %s687_s3 = inlined_call_operand.hbm [shape: bf16[128,128], index: 3, kind: input, shape index: {}]   ;;  %s688_s4 = inlined_call_operand.hbm [shape: f32[1,128], index: 4, kind: input, shape index: {}]   ;;  %s689_s5 = inlined_call_operand.hbm [shape: f32[8,128], index: 5, kind: output, shape index: {}, may-alias: {0,5}]  }
   0x1   :  { %11 = vsyncpa [#allocation6], 0 }
   0x2   :  { %12 = vsyncpa [#allocation9], 0 }
   0x3   :  { %13 = vsyncpa [#allocation4], 0  ;;  %s572_s18 = smov [#allocation5]   ;;  %s432_s22 = scalar_lea.hbm %s685_s1, 1024 }
   0x4   :  { %s29_s19 = sshll.u32 %s572_s18, 4  ;;  %p433_p0 = scmp.ne.s32.totalorder %s685_s1, %s432_s22  ;;  %s30_s19 = int_to_ptr.vmem [resolvable:$true] %s29_s19 }
   0x5   :  { %p436_p1 = scmp.lt.u32.totalorder %s432_s22, %s685_s1 }
   0x7   :  { %p438_p2 = pnand %p436_p1, %p433_p0 }
   0x9   :  { %441 = shalt.err (!%p438_p2)
}
   0xa   :  { %s442_s27 = scalar_lea.vmem %s30_s19, 1024  ;;  %p447_p4 = scmp.lt.s32.totalorder %s30_s19, %s30_s19 }
   0xb   :  { %p443_p3 = scmp.ne.s32.totalorder %s30_s19, %s442_s27  ;;  %p448_p5 = scmp.lt.s32.totalorder %s442_s27, %s442_s27 }
   0xd   :  { %p449_p6 = por %p448_p5, %p447_p4 }
   0xf   :  { %p450_p7 = pnand %p449_p6, %p443_p3 }
  0x11   :  { %453 = shalt.err (!%p450_p7)
}
  0x12   :  { %s573_s28 = smov 64   ;;  %s574_s29 = smov 4  }
  0x13   :  { %35 = dma.hbm_to_vmem [thread:$0]  %s685_s1, 1024, %s30_s19, [#allocation6], %s573_s28, %s573_s28, %s574_s29  }
  0x14   :  { %s575_s7 = smov [#allocation8]   ;;  %s576_s9 = smov [#allocation2]  }
  0x15   :  { %s51_s8 = sshll.u32 %s575_s7, 4  ;;  %s20_s10 = sshll.u32 %s576_s9, 4  ;;  %s52_s8 = int_to_ptr.vmem [resolvable:$true] %s51_s8  ;;  %s21_s10 = int_to_ptr.vmem [resolvable:$true] %s20_s10 }
  0x16   :  { %s454_s13 = scalar_lea.hbm %s687_s3, 1024 }
  0x17   :  { %p455_p8 = scmp.ne.s32.totalorder %s687_s3, %s454_s13  ;;  %p458_p9 = scmp.lt.u32.totalorder %s454_s13, %s687_s3 }
  0x19   :  { %p460_p10 = pnand %p458_p9, %p455_p8 }
  0x1b   :  { %463 = shalt.err (!%p460_p10)
}
  0x1c   :  { %s464_s1 = scalar_lea.vmem %s52_s8, 1024  ;;  %p469_p12 = scmp.lt.s32.totalorder %s52_s8, %s52_s8 }
  0x1d   :  { %p465_p11 = scmp.ne.s32.totalorder %s52_s8, %s464_s1  ;;  %p470_p13 = scmp.lt.s32.totalorder %s464_s1, %s464_s1 }
  0x1f   :  { %p471_p0 = por %p470_p13, %p469_p12 }
  0x21   :  { %p472_p1 = pnand %p471_p0, %p465_p11 }
  0x23   :  { %475 = shalt.err (!%p472_p1)
}
  0x24   :  { %57 = dma.hbm_to_vmem [thread:$0]  %s687_s3, 1024, %s52_s8, [#allocation9], %s573_s28, %s573_s28, %s574_s29  }
  0x25   :  { %s476_s22 = scalar_lea.hbm %s684_s0, 128 }
  0x26   :  { %p477_p2 = scmp.ne.s32.totalorder %s684_s0, %s476_s22  ;;  %p480_p3 = scmp.lt.u32.totalorder %s476_s22, %s684_s0 }
  0x28   :  { %p482_p4 = pnand %p480_p3, %p477_p2 }
  0x2a   :  { %485 = shalt.err (!%p482_p4)
}
  0x2b   :  { %s486_s27 = scalar_lea.vmem %s21_s10, 128  ;;  %p491_p6 = scmp.lt.s32.totalorder %s21_s10, %s21_s10 }
  0x2c   :  { %p487_p5 = scmp.ne.s32.totalorder %s21_s10, %s486_s27  ;;  %p492_p7 = scmp.lt.s32.totalorder %s486_s27, %s486_s27 }
  0x2e   :  { %p493_p8 = por %p492_p7, %p491_p6 }
  0x30   :  { %p494_p9 = pnand %p493_p8, %p487_p5 }
  0x32   :  { %497 = shalt.err (!%p494_p9)
}
  0x33   :  { %23 = dma.hbm_to_vmem [thread:$0]  %s684_s0, 128, %s21_s10, [#allocation3]  }
  0x34   :  { %s577_s29 = smov [#allocation7]   ;;  %s578_s6 = smov [#allocation10]  }
  0x35   :  { %s42_s30 = sshll.u32 %s577_s29, 4  ;;  %s64_s7 = sshll.u32 %s578_s6, 4  ;;  %s43_s30 = int_to_ptr.vmem [resolvable:$true] %s42_s30  ;;  %s65_s7 = int_to_ptr.vmem [resolvable:$true] %s64_s7 }
  0x36   :  { %s498_s11 = scalar_lea.hbm %s686_s2, 16 }
  0x37   :  { %p499_p10 = scmp.ne.s32.totalorder %s686_s2, %s498_s11  ;;  %p502_p11 = scmp.lt.u32.totalorder %s498_s11, %s686_s2 }
  0x39   :  { %p504_p12 = pnand %p502_p11, %p499_p10 }
  0x3b   :  { %507 = shalt.err (!%p504_p12)
}
  0x3c   :  { %s508_s0 = scalar_lea.vmem %s43_s30, 16  ;;  %s512_s10 = scalar_lea.vmem %s43_s30, 32 }
  0x3d   :  { %p509_p13 = scmp.ne.s32.totalorder %s43_s30, %s508_s0  ;;  %p513_p0 = scmp.lt.s32.totalorder %s43_s30, %s43_s30 }
  0x3e   :  { %p514_p1 = scmp.lt.s32.totalorder %s512_s10, %s508_s0 }
  0x40   :  { %p515_p2 = por %p514_p1, %p513_p0 }
  0x42   :  { %p516_p3 = pnand %p515_p2, %p509_p13 }
  0x44   :  { %519 = shalt.err (!%p516_p3)
}
  0x45   :  { %45 = dma.hbm_to_vmem [thread:$0]  %s686_s2, 16, %s43_s30, [#allocation6]  }
  0x46   :  { %s520_s19 = scalar_lea.hbm %s688_s4, 16 }
  0x47   :  { %p521_p4 = scmp.ne.s32.totalorder %s688_s4, %s520_s19  ;;  %p524_p5 = scmp.lt.u32.totalorder %s520_s19, %s688_s4 }
  0x49   :  { %p526_p6 = pnand %p524_p5, %p521_p4 }
  0x4b   :  { %529 = shalt.err (!%p526_p6)
}
  0x4c   :  { %s530_s24 = scalar_lea.vmem %s65_s7, 16  ;;  %s534_s25 = scalar_lea.vmem %s65_s7, 32 }
  0x4d   :  { %p531_p7 = scmp.ne.s32.totalorder %s65_s7, %s530_s24  ;;  %p535_p8 = scmp.lt.s32.totalorder %s65_s7, %s65_s7 }
  0x4e   :  { %p536_p9 = scmp.lt.s32.totalorder %s534_s25, %s530_s24 }
  0x50   :  { %p537_p10 = por %p536_p9, %p535_p8 }
  0x52   :  { %p538_p11 = pnand %p537_p10, %p531_p7 }
  0x54   :  { %541 = shalt.err (!%p538_p11)
}
  0x55   :  { %67 = dma.hbm_to_vmem [thread:$0]  %s688_s4, 16, %s65_s7, [#allocation9]  }
  0x56   :  { %564 = dma.done.wait [#allocation3], 128  }
  0x57   :  { %565 = vsyncadd [#allocation3], 4294967168 }
  0x58   :  { %566 = dma.done.wait [#allocation6], 1040  }
  0x59   :  { %567 = vsyncadd [#allocation6], 4294966256 }
  0x5a   :  { %568 = dma.done.wait [#allocation9], 1040  }
  0x5b   :  { %569 = vsyncadd [#allocation9], 4294966256  ;;  %v579_v0 = vmov 0.0   ;;  %vm580_vm0 = vmmov 0   ;;  %v416_v1 = vld [vmem:[#allocation5] sm:$0xff]   ;;  %v417_v2 = vld [vmem:[#allocation5 + $0x8] sm:$0xff]  }
  0x5c   :  { %366 = vmatprep.subr.bf16.mxu0 %v579_v0  ;;  %382 = vmatprep.mubr.msk.bf16.mxu0 %vm580_vm0, %v579_v0  ;;  %v418_v3 = vld [vmem:[#allocation5 + $0x10] sm:$0xff]   ;;  %v424_v4 = vld [vmem:[#allocation8] sm:$0xff]   ;;  %v419_v5 = vld [vmem:[#allocation5 + $0x18] sm:$0xff]   ;;  %s581_s4 = smov [#allocation11]  }
  0x5d   :  { %386 = vmatprep.subr.bf16.mxu1 %v579_v0  ;;  %402 = vmatprep.mubr.msk.bf16.mxu1 %vm580_vm0, %v579_v0  ;;  %v425_v6 = vld [vmem:[#allocation8 + $0x8] sm:$0xff]   ;;  %v420_v7 = vld [vmem:[#allocation5 + $0x20] sm:$0xff]   ;;  %v426_v8 = vld [vmem:[#allocation8 + $0x10] sm:$0xff]   ;;  %s319_s27 = sshll.u32 %s581_s4, 4  ;;  %s320_s27 = int_to_ptr.vmem [resolvable:$true] %s319_s27 }
  0x5e   :  { %367 = vmatpush3.bf16.msra.mxu0 %v416_v1  ;;  %387 = vmatpush3.bf16.msra.mxu1 %v424_v4  ;;  %v421_v9 = vld [vmem:[#allocation5 + $0x28] sm:$0xff]   ;;  %v427_v10 = vld [vmem:[#allocation8 + $0x18] sm:$0xff]   ;;  %v422_v11 = vld [vmem:[#allocation5 + $0x30] sm:$0xff]   ;;  %s542_s3 = scalar_lea.vmem %s320_s27, 128  ;;  %p547_p13 = scmp.lt.s32.totalorder %s320_s27, %s320_s27 }
  0x5f   :  { %368 = vmatprep.subr.bf16.mxu0 %v579_v0  ;;  %388 = vmatprep.subr.bf16.mxu1 %v579_v0  ;;  %v428_v12 = vld [vmem:[#allocation8 + $0x20] sm:$0xff]   ;;  %v423_v13 = vld [vmem:[#allocation5 + $0x38] sm:$0xff]   ;;  %v429_v15 = vld [vmem:[#allocation8 + $0x28] sm:$0xff]   ;;  %p543_p12 = scmp.ne.s32.totalorder %s320_s27, %s542_s3  ;;  %p548_p0 = scmp.lt.s32.totalorder %s542_s3, %s542_s3 }
  0x60   :  { %v84_v14 = vld [vmem:[#allocation2] sm:$0xff]  ;;  %v330_v19 = vld [vmem:[#allocation7] ss:$0 sm:$0xff]  ;;  %v339_v27 = vld [vmem:[#allocation10] ss:$0 sm:$0xff] }
  0x61   :  { %v85_v16 = vpack.c.bf16 %v84_v14, %v84_v14  ;;  %v430_v17 = vld [vmem:[#allocation8 + $0x30] sm:$0xff]   ;;  %v431_v18 = vld [vmem:[#allocation8 + $0x38] sm:$0xff]   ;;  %p549_p1 = por %p548_p0, %p547_p13 }
  0x62   :  { %369 = vmatpush3.bf16.msra.mxu0 %v417_v2  ;;  %389 = vmatpush3.bf16.msra.mxu1 %v425_v6 }
  0x63   :  { %370 = vmatprep.subr.bf16.mxu0 %v579_v0  ;;  %390 = vmatprep.subr.bf16.mxu1 %v579_v0  ;;  %p550_p2 = pnand %p549_p1, %p543_p12 }
  0x66   :  { %371 = vmatpush3.bf16.msra.mxu0 %v418_v3  ;;  %391 = vmatpush3.bf16.msra.mxu1 %v426_v8 }
  0x67   :  { %372 = vmatprep.subr.bf16.mxu0 %v579_v0  ;;  %392 = vmatprep.subr.bf16.mxu1 %v579_v0 }
  0x6a   :  { %373 = vmatpush3.bf16.msra.mxu0 %v419_v5  ;;  %393 = vmatpush3.bf16.msra.mxu1 %v427_v10 }
  0x6b   :  { %374 = vmatprep.subr.bf16.mxu0 %v579_v0  ;;  %394 = vmatprep.subr.bf16.mxu1 %v579_v0 }
  0x6e   :  { %375 = vmatpush3.bf16.msra.mxu0 %v420_v7  ;;  %395 = vmatpush3.bf16.msra.mxu1 %v428_v12 }
  0x6f   :  { %376 = vmatprep.subr.bf16.mxu0 %v579_v0  ;;  %396 = vmatprep.subr.bf16.mxu1 %v579_v0 }
  0x72   :  { %377 = vmatpush3.bf16.msra.mxu0 %v421_v9  ;;  %397 = vmatpush3.bf16.msra.mxu1 %v429_v15 }
  0x73   :  { %378 = vmatprep.subr.bf16.mxu0 %v579_v0  ;;  %398 = vmatprep.subr.bf16.mxu1 %v579_v0 }
  0x76   :  { %379 = vmatpush3.bf16.msra.mxu0 %v422_v11  ;;  %399 = vmatpush3.bf16.msra.mxu1 %v430_v17 }
  0x77   :  { %380 = vmatprep.subr.bf16.mxu0 %v579_v0  ;;  %400 = vmatprep.subr.bf16.mxu1 %v579_v0 }
  0x7a   :  { %381 = vmatpush3.bf16.msra.mxu0 %v423_v13  ;;  %401 = vmatpush3.bf16.msra.mxu1 %v431_v18 }
  0x7d   :  { %383 = vmatmul.mubr.bf16.vlgmr.msra.gmra.mrb[0].mxu0 %v85_v16 }
 0x150   :  { %v191_v20 = vpop.f32.mrb[0].mxu0 }
 0x151   :  { %v192_v21 = vadd.f32 %v330_v19, %v191_v20  ;;  %v384_v22 = vpop.f32.mrb[1].mxu0 }
 0x152   :  { %v194_v23 = vpop.f32.mrb[2].mxu0 }
 0x153   :  { %v197_v24 = vmax.f32 %v192_v21, 0.0  ;;  %v385_v25 = vpop.f32.mrb[3].mxu0 }
 0x155   :  { %v198_v26 = vpack.c.bf16 %v197_v24, %v197_v24 }
 0x157   :  { %403 = vmatmul.mubr.bf16.vlgmr.msra.gmra.mrb[0].mxu1 %v198_v26 }
 0x22a   :  { %v304_v28 = vpop.f32.mrb[0].mxu1 }
 0x22b   :  { %v305_v29 = vadd.f32 %v339_v27, %v304_v28  ;;  %v404_v30 = vpop.f32.mrb[1].mxu1 }
 0x22c   :  { %v307_v31 = vpop.f32.mrb[2].mxu1 }
 0x22d   :  { %v310_v32 = vadd.f32 %v305_v29, %v84_v14  ;;  %v405_v33 = vpop.f32.mrb[3].mxu1 }
 0x22f   :  { %v311_v34 = vmax.f32 %v310_v32, 0.0 }
 0x231   :  { %312 = vst [vmem:[#allocation11] sm:$0xff] %v311_v34 }
 0x232   :  { %553 = shalt.err (!%p550_p2)
}
 0x233   :  { %s554_s30 = scalar_lea.hbm %s689_s5, 128 }
 0x234   :  { %p555_p3 = scmp.ne.s32.totalorder %s689_s5, %s554_s30  ;;  %p558_p4 = scmp.lt.u32.totalorder %s554_s30, %s689_s5 }
 0x236   :  { %p560_p5 = pnand %p558_p4, %p555_p3 }
 0x238   :  { %563 = shalt.err (!%p560_p5)
}
 0x239   :  { %322 = dma.vmem_to_hbm [thread:$0]  %s320_s27, 128, %s689_s5, [#allocation4]  }
 0x23a   :  { %570 = dma.done.wait [#allocation4], 128  }
 0x23b   :  { %571 = vsyncadd [#allocation4], 4294967168 }
 0x23c   :  { %326 = vsyncpa [#allocation3], 1 }
 0x23d   :  { %327 = vsyncpa [#allocation6], 1 }
 0x23e   :  { %328 = vsyncpa [#allocation9], 1 }
 0x23f   :  { %329 = vsyncpa [#allocation4], 1 }

// kernel: tpu_custom_call.1
= control target key start
LH: loop header
LB: loop body
LE: loop exit
PB: predicated region body
PF: predicated region fallthrough
CT: control target
= control target key end

     0   :  { %10 = vsyncpa [#allocation3], 0  ;;  %s684_s0 = inlined_call_operand.hbm [shape: f32[8,128], index: 0, kind: input, shape index: {}, may-alias: {0,5}]   ;;  %s685_s1 = inlined_call_operand.hbm [shape: bf16[128,128], index: 1, kind: input, shape index: {}]   ;;  %s686_s2 = inlined_call_operand.hbm [shape: f32[1,128], index: 2, kind: input, shape index: {}]   ;;  %s687_s3 = inlined_call_operand.hbm [shape: bf16[128,128], index: 3, kind: input, shape index: {}]   ;;  %s688_s4 = inlined_call_operand.hbm [shape: f32[1,128], index: 4, kind: input, shape index: {}]   ;;  %s689_s5 = inlined_call_operand.hbm [shape: f32[8,128], index: 5, kind: output, shape index: {}, may-alias: {0,5}]  }
   0x1   :  { %11 = vsyncpa [#allocation6], 0 }
   0x2   :  { %12 = vsyncpa [#allocation9], 0 }
   0x3   :  { %13 = vsyncpa [#allocation4], 0  ;;  %s572_s18 = smov [#allocation5]   ;;  %s432_s22 = scalar_lea.hbm %s685_s1, 1024 }
   0x4   :  { %s29_s19 = sshll.u32 %s572_s18, 4  ;;  %p433_p0 = scmp.ne.s32.totalorder %s685_s1, %s432_s22  ;;  %s30_s19 = int_to_ptr.vmem [resolvable:$true] %s29_s19 }
   0x5   :  { %p436_p1 = scmp.lt.u32.totalorder %s432_s22, %s685_s1 }
   0x7   :  { %p438_p2 = pnand %p436_p1, %p433_p0 }
   0x9   :  { %441 = shalt.err (!%p438_p2)
}
   0xa   :  { %s442_s27 = scalar_lea.vmem %s30_s19, 1024  ;;  %p447_p4 = scmp.lt.s32.totalorder %s30_s19, %s30_s19 }
   0xb   :  { %p443_p3 = scmp.ne.s32.totalorder %s30_s19, %s442_s27  ;;  %p448_p5 = scmp.lt.s32.totalorder %s442_s27, %s442_s27 }
   0xd   :  { %p449_p6 = por %p448_p5, %p447_p4 }
   0xf   :  { %p450_p7 = pnand %p449_p6, %p443_p3 }
  0x11   :  { %453 = shalt.err (!%p450_p7)
}
  0x12   :  { %s573_s28 = smov 64   ;;  %s574_s29 = smov 4  }
  0x13   :  { %35 = dma.hbm_to_vmem [thread:$0]  %s685_s1, 1024, %s30_s19, [#allocation6], %s573_s28, %s573_s28, %s574_s29  }
  0x14   :  { %s575_s7 = smov [#allocation8]   ;;  %s576_s9 = smov [#allocation2]  }
  0x15   :  { %s51_s8 = sshll.u32 %s575_s7, 4  ;;  %s20_s10 = sshll.u32 %s576_s9, 4  ;;  %s52_s8 = int_to_ptr.vmem [resolvable:$true] %s51_s8  ;;  %s21_s10 = int_to_ptr.vmem [resolvable:$true] %s20_s10 }
  0x16   :  { %s454_s13 = scalar_lea.hbm %s687_s3, 1024 }
  0x17   :  { %p455_p8 = scmp.ne.s32.totalorder %s687_s3, %s454_s13  ;;  %p458_p9 = scmp.lt.u32.totalorder %s454_s13, %s687_s3 }
  0x19   :  { %p460_p10 = pnand %p458_p9, %p455_p8 }
  0x1b   :  { %463 = shalt.err (!%p460_p10)
}
  0x1c   :  { %s464_s1 = scalar_lea.vmem %s52_s8, 1024  ;;  %p469_p12 = scmp.lt.s32.totalorder %s52_s8, %s52_s8 }
  0x1d   :  { %p465_p11 = scmp.ne.s32.totalorder %s52_s8, %s464_s1  ;;  %p470_p13 = scmp.lt.s32.totalorder %s464_s1, %s464_s1 }
  0x1f   :  { %p471_p0 = por %p470_p13, %p469_p12 }
  0x21   :  { %p472_p1 = pnand %p471_p0, %p465_p11 }
  0x23   :  { %475 = shalt.err (!%p472_p1)
}
  0x24   :  { %57 = dma.hbm_to_vmem [thread:$0]  %s687_s3, 1024, %s52_s8, [#allocation9], %s573_s28, %s573_s28, %s574_s29  }
  0x25   :  { %s476_s22 = scalar_lea.hbm %s684_s0, 128 }
  0x26   :  { %p477_p2 = scmp.ne.s32.totalorder %s684_s0, %s476_s22  ;;  %p480_p3 = scmp.lt.u32.totalorder %s476_s22, %s684_s0 }
  0x28   :  { %p482_p4 = pnand %p480_p3, %p477_p2 }
  0x2a   :  { %485 = shalt.err (!%p482_p4)
}
  0x2b   :  { %s486_s27 = scalar_lea.vmem %s21_s10, 128  ;;  %p491_p6 = scmp.lt.s32.totalorder %s21_s10, %s21_s10 }
  0x2c   :  { %p487_p5 = scmp.ne.s32.totalorder %s21_s10, %s486_s27  ;;  %p492_p7 = scmp.lt.s32.totalorder %s486_s27, %s486_s27 }
  0x2e   :  { %p493_p8 = por %p492_p7, %p491_p6 }
  0x30   :  { %p494_p9 = pnand %p493_p8, %p487_p5 }
  0x32   :  { %497 = shalt.err (!%p494_p9)
}
  0x33   :  { %23 = dma.hbm_to_vmem [thread:$0]  %s684_s0, 128, %s21_s10, [#allocation3]  }
  0x34   :  { %s577_s29 = smov [#allocation7]   ;;  %s578_s6 = smov [#allocation10]  }
  0x35   :  { %s42_s30 = sshll.u32 %s577_s29, 4  ;;  %s64_s7 = sshll.u32 %s578_s6, 4  ;;  %s43_s30 = int_to_ptr.vmem [resolvable:$true] %s42_s30  ;;  %s65_s7 = int_to_ptr.vmem [resolvable:$true] %s64_s7 }
  0x36   :  { %s498_s11 = scalar_lea.hbm %s686_s2, 16 }
  0x37   :  { %p499_p10 = scmp.ne.s32.totalorder %s686_s2, %s498_s11  ;;  %p502_p11 = scmp.lt.u32.totalorder %s498_s11, %s686_s2 }
  0x39   :  { %p504_p12 = pnand %p502_p11, %p499_p10 }
  0x3b   :  { %507 = shalt.err (!%p504_p12)
}
  0x3c   :  { %s508_s0 = scalar_lea.vmem %s43_s30, 16  ;;  %s512_s10 = scalar_lea.vmem %s43_s30, 32 }
  0x3d   :  { %p509_p13 = scmp.ne.s32.totalorder %s43_s30, %s508_s0  ;;  %p513_p0 = scmp.lt.s32.totalorder %s43_s30, %s43_s30 }
  0x3e   :  { %p514_p1 = scmp.lt.s32.totalorder %s512_s10, %s508_s0 }
  0x40   :  { %p515_p2 = por %p514_p1, %p513_p0 }
  0x42   :  { %p516_p3 = pnand %p515_p2, %p509_p13 }
  0x44   :  { %519 = shalt.err (!%p516_p3)
}
  0x45   :  { %45 = dma.hbm_to_vmem [thread:$0]  %s686_s2, 16, %s43_s30, [#allocation6]  }
  0x46   :  { %s520_s19 = scalar_lea.hbm %s688_s4, 16 }
  0x47   :  { %p521_p4 = scmp.ne.s32.totalorder %s688_s4, %s520_s19  ;;  %p524_p5 = scmp.lt.u32.totalorder %s520_s19, %s688_s4 }
  0x49   :  { %p526_p6 = pnand %p524_p5, %p521_p4 }
  0x4b   :  { %529 = shalt.err (!%p526_p6)
}
  0x4c   :  { %s530_s24 = scalar_lea.vmem %s65_s7, 16  ;;  %s534_s25 = scalar_lea.vmem %s65_s7, 32 }
  0x4d   :  { %p531_p7 = scmp.ne.s32.totalorder %s65_s7, %s530_s24  ;;  %p535_p8 = scmp.lt.s32.totalorder %s65_s7, %s65_s7 }
  0x4e   :  { %p536_p9 = scmp.lt.s32.totalorder %s534_s25, %s530_s24 }
  0x50   :  { %p537_p10 = por %p536_p9, %p535_p8 }
  0x52   :  { %p538_p11 = pnand %p537_p10, %p531_p7 }
  0x54   :  { %541 = shalt.err (!%p538_p11)
}
  0x55   :  { %67 = dma.hbm_to_vmem [thread:$0]  %s688_s4, 16, %s65_s7, [#allocation9]  }
  0x56   :  { %564 = dma.done.wait [#allocation3], 128  }
  0x57   :  { %565 = vsyncadd [#allocation3], 4294967168 }
  0x58   :  { %566 = dma.done.wait [#allocation6], 1040  }
  0x59   :  { %567 = vsyncadd [#allocation6], 4294966256 }
  0x5a   :  { %568 = dma.done.wait [#allocation9], 1040  }
  0x5b   :  { %569 = vsyncadd [#allocation9], 4294966256  ;;  %v579_v0 = vmov 0.0   ;;  %vm580_vm0 = vmmov 0   ;;  %v416_v1 = vld [vmem:[#allocation5] sm:$0xff]   ;;  %v417_v2 = vld [vmem:[#allocation5 + $0x8] sm:$0xff]  }
  0x5c   :  { %366 = vmatprep.subr.bf16.mxu0 %v579_v0  ;;  %382 = vmatprep.mubr.msk.bf16.mxu0 %vm580_vm0, %v579_v0  ;;  %v418_v3 = vld [vmem:[#allocation5 + $0x10] sm:$0xff]   ;;  %v424_v4 = vld [vmem:[#allocation8] sm:$0xff]   ;;  %v419_v5 = vld [vmem:[#allocation5 + $0x18] sm:$0xff]   ;;  %s581_s4 = smov [#allocation11]  }
  0x5d   :  { %386 = vmatprep.subr.bf16.mxu1 %v579_v0  ;;  %402 = vmatprep.mubr.msk.bf16.mxu1 %vm580_vm0, %v579_v0  ;;  %v425_v6 = vld [vmem:[#allocation8 + $0x8] sm:$0xff]   ;;  %v420_v7 = vld [vmem:[#allocation5 + $0x20] sm:$0xff]   ;;  %v426_v8 = vld [vmem:[#allocation8 + $0x10] sm:$0xff]   ;;  %s319_s27 = sshll.u32 %s581_s4, 4  ;;  %s320_s27 = int_to_ptr.vmem [resolvable:$true] %s319_s27 }
  0x5e   :  { %367 = vmatpush3.bf16.msra.mxu0 %v416_v1  ;;  %387 = vmatpush3.bf16.msra.mxu1 %v424_v4  ;;  %v421_v9 = vld [vmem:[#allocation5 + $0x28] sm:$0xff]   ;;  %v427_v10 = vld [vmem:[#allocation8 + $0x18] sm:$0xff]   ;;  %v422_v11 = vld [vmem:[#allocation5 + $0x30] sm:$0xff]   ;;  %s542_s3 = scalar_lea.vmem %s320_s27, 128  ;;  %p547_p13 = scmp.lt.s32.totalorder %s320_s27, %s320_s27 }
  0x5f   :  { %368 = vmatprep.subr.bf16.mxu0 %v579_v0  ;;  %388 = vmatprep.subr.bf16.mxu1 %v579_v0  ;;  %v428_v12 = vld [vmem:[#allocation8 + $0x20] sm:$0xff]   ;;  %v423_v13 = vld [vmem:[#allocation5 + $0x38] sm:$0xff]   ;;  %v429_v15 = vld [vmem:[#allocation8 + $0x28] sm:$0xff]   ;;  %p543_p12 = scmp.ne.s32.totalorder %s320_s27, %s542_s3  ;;  %p548_p0 = scmp.lt.s32.totalorder %s542_s3, %s542_s3 }
  0x60   :  { %v84_v14 = vld [vmem:[#allocation2] sm:$0xff]  ;;  %v330_v19 = vld [vmem:[#allocation7] ss:$0 sm:$0xff]  ;;  %v339_v27 = vld [vmem:[#allocation10] ss:$0 sm:$0xff] }
  0x61   :  { %v85_v16 = vpack.c.bf16 %v84_v14, %v84_v14  ;;  %v430_v17 = vld [vmem:[#allocation8 + $0x30] sm:$0xff]   ;;  %v431_v18 = vld [vmem:[#allocation8 + $0x38] sm:$0xff]   ;;  %p549_p1 = por %p548_p0, %p547_p13 }
  0x62   :  { %369 = vmatpush3.bf16.msra.mxu0 %v417_v2  ;;  %389 = vmatpush3.bf16.msra.mxu1 %v425_v6 }
  0x63   :  { %370 = vmatprep.subr.bf16.mxu0 %v579_v0  ;;  %390 = vmatprep.subr.bf16.mxu1 %v579_v0  ;;  %p550_p2 = pnand %p549_p1, %p543_p12 }
  0x66   :  { %371 = vmatpush3.bf16.msra.mxu0 %v418_v3  ;;  %391 = vmatpush3.bf16.msra.mxu1 %v426_v8 }
  0x67   :  { %372 = vmatprep.subr.bf16.mxu0 %v579_v0  ;;  %392 = vmatprep.subr.bf16.mxu1 %v579_v0 }
  0x6a   :  { %373 = vmatpush3.bf16.msra.mxu0 %v419_v5  ;;  %393 = vmatpush3.bf16.msra.mxu1 %v427_v10 }
  0x6b   :  { %374 = vmatprep.subr.bf16.mxu0 %v579_v0  ;;  %394 = vmatprep.subr.bf16.mxu1 %v579_v0 }
  0x6e   :  { %375 = vmatpush3.bf16.msra.mxu0 %v420_v7  ;;  %395 = vmatpush3.bf16.msra.mxu1 %v428_v12 }
  0x6f   :  { %376 = vmatprep.subr.bf16.mxu0 %v579_v0  ;;  %396 = vmatprep.subr.bf16.mxu1 %v579_v0 }
  0x72   :  { %377 = vmatpush3.bf16.msra.mxu0 %v421_v9  ;;  %397 = vmatpush3.bf16.msra.mxu1 %v429_v15 }
  0x73   :  { %378 = vmatprep.subr.bf16.mxu0 %v579_v0  ;;  %398 = vmatprep.subr.bf16.mxu1 %v579_v0 }
  0x76   :  { %379 = vmatpush3.bf16.msra.mxu0 %v422_v11  ;;  %399 = vmatpush3.bf16.msra.mxu1 %v430_v17 }
  0x77   :  { %380 = vmatprep.subr.bf16.mxu0 %v579_v0  ;;  %400 = vmatprep.subr.bf16.mxu1 %v579_v0 }
  0x7a   :  { %381 = vmatpush3.bf16.msra.mxu0 %v423_v13  ;;  %401 = vmatpush3.bf16.msra.mxu1 %v431_v18 }
  0x7d   :  { %383 = vmatmul.mubr.bf16.vlgmr.msra.gmra.mrb[0].mxu0 %v85_v16 }
 0x150   :  { %v191_v20 = vpop.f32.mrb[0].mxu0 }
 0x151   :  { %v192_v21 = vadd.f32 %v330_v19, %v191_v20  ;;  %v384_v22 = vpop.f32.mrb[1].mxu0 }
 0x152   :  { %v194_v23 = vpop.f32.mrb[2].mxu0 }
 0x153   :  { %v197_v24 = vmax.f32 %v192_v21, 0.0  ;;  %v385_v25 = vpop.f32.mrb[3].mxu0 }
 0x155   :  { %v198_v26 = vpack.c.bf16 %v197_v24, %v197_v24 }
 0x157   :  { %403 = vmatmul.mubr.bf16.vlgmr.msra.gmra.mrb[0].mxu1 %v198_v26 }
 0x22a   :  { %v304_v28 = vpop.f32.mrb[0].mxu1 }
 0x22b   :  { %v305_v29 = vadd.f32 %v339_v27, %v304_v28  ;;  %v404_v30 = vpop.f32.mrb[1].mxu1 }
 0x22c   :  { %v307_v31 = vpop.f32.mrb[2].mxu1 }
 0x22d   :  { %v310_v32 = vadd.f32 %v305_v29, %v84_v14  ;;  %v405_v33 = vpop.f32.mrb[3].mxu1 }
 0x22f   :  { %v311_v34 = vmax.f32 %v310_v32, 0.0 }
 0x231   :  { %312 = vst [vmem:[#allocation11] sm:$0xff] %v311_v34 }
 0x232   :  { %553 = shalt.err (!%p550_p2)
}
 0x233   :  { %s554_s30 = scalar_lea.hbm %s689_s5, 128 }
 0x234   :  { %p555_p3 = scmp.ne.s32.totalorder %s689_s5, %s554_s30  ;;  %p558_p4 = scmp.lt.u32.totalorder %s554_s30, %s689_s5 }
 0x236   :  { %p560_p5 = pnand %p558_p4, %p555_p3 }
 0x238   :  { %563 = shalt.err (!%p560_p5)
}
 0x239   :  { %322 = dma.vmem_to_hbm [thread:$0]  %s320_s27, 128, %s689_s5, [#allocation4]  }
 0x23a   :  { %570 = dma.done.wait [#allocation4], 128  }
 0x23b   :  { %571 = vsyncadd [#allocation4], 4294967168 }
 0x23c   :  { %326 = vsyncpa [#allocation3], 1 }
 0x23d   :  { %327 = vsyncpa [#allocation6], 1 }
 0x23e   :  { %328 = vsyncpa [#allocation9], 1 }
 0x23f   :  { %329 = vsyncpa [#allocation4], 1 }

</bundles_post_ra>
